<compile_context>
chip_gen: v7x
topology: tpu7x:2x2x1
jax: 0.10.0
libtpu: 0.0.40
codegen_flags: <defaults>
</compile_context>

<pallas_src>
import functools

import numpy as np

import jax
import jax.numpy as jnp
from jax.experimental import pallas as pl
from jax.experimental.pallas import tpu as pltpu


def _pick_channel_block(C, HW, itemsize, budget=1 << 20):
    """Channel rows per grid step: divides C, multiple of 8 when possible,
    per-step input tile roughly <= `budget` bytes (VMEM-safe across chips)."""
    if C <= 8:
        return C
    cands = [cb for cb in range(8, C + 1, 8)
             if C % cb == 0 and cb * HW * itemsize <= budget]
    if not cands:
        cands = [cb for cb in range(1, C + 1)
                 if C % cb == 0 and cb * HW * itemsize <= budget]
    return max(cands) if cands else 1


def _dw_kernel(x_ref, w_ref, b_ref, m_ref, o_ref, scr_ref, *, K, dil, pad, W, HW, CB):
    # x_ref : (1, CB, HW)   input block, flattened spatial on the lane axis
    # w_ref : (CB, K*K)     per-channel filter taps
    # b_ref : (CB, 1)       per-channel bias
    # m_ref : (K, HW)       per-kw column-validity masks (0/1 float32)
    # o_ref : (1, CB, HW)   output block (lane-dense -> unmasked stores)
    # scr_ref: (CB, HW + 2*P0) zero-haloed flat row buffer in VMEM
    P0 = pad * (W + 1)            # flat halo width on each side of a plane

    # Stage the block into the haloed scratch (halo zeroed every step so the
    # kernel is correct under any megacore grid partitioning).
    if P0 > 0:
        scr_ref[:, pl.ds(0, P0)] = jnp.zeros((CB, P0), jnp.float32)
        scr_ref[:, pl.ds(P0 + HW, P0)] = jnp.zeros((CB, P0), jnp.float32)
    scr_ref[:, pl.ds(P0, HW)] = x_ref[0].astype(jnp.float32)

    # Hoisted loads: weights / bias / masks read once per grid step.
    wts = w_ref[...].astype(jnp.float32)       # (CB, K*K)
    bias = b_ref[...].astype(jnp.float32)      # (CB, 1)
    masks = m_ref[...]                         # (K, HW)

    # Static K*K tap unroll: each tap is a static lane-offset slice of the
    # scratch plus a VPU multiply-accumulate against a per-channel scalar column.
    acc = jnp.zeros((CB, HW), jnp.float32)
    for kh in range(K):
        for kw in range(K):
            s = kh * dil * W + kw * dil                  # static flat shift
            xs = scr_ref[:, pl.ds(s, HW)]                # (CB, HW)
            if kw * dil - pad != 0:                      # width-border wrap -> mask
                xs = xs * masks[kw:kw + 1, :]
            t = kh * K + kw
            acc = acc + xs * wts[:, t:t + 1]
    acc = acc + bias
    o_ref[0] = acc.astype(o_ref.dtype)


def dw_forward(x_nchw, weight_oikk, bias, *, K, pad, dil):
    """Depthwise conv2d (groups == in_channels), stride 1, 'same'-size output.

    x_nchw      : (N, C, H, W)
    weight_oikk : (C, 1, K, K)   PyTorch depthwise layout
    bias        : (C,)
    returns     : (N, C, H, W)
    """
    N, C, H, W = x_nchw.shape
    if dil * (K - 1) != 2 * pad:
        # TODO(synk): non-'same' output sizes (2*pad != dilation*(k-1)) need a
        # different flattened-stride formulation; ASPP's dw always uses 'same'.
        raise NotImplementedError("only 'same'-size depthwise conv implemented")

    HW = H * W
    P0 = pad * (W + 1)
    HWP = HW + 2 * P0

    # Metadata-only reshapes: no HBM transpose / pad round-trips.
    x3 = x_nchw.reshape(N, C, HW)
    w2 = weight_oikk.reshape(C, K * K)
    b2 = bias.reshape(C, 1)

    # Per-tap column-validity masks for the flattened-width wrap-around
    # (tiny constant built on host; avoids in-kernel integer mod on vectors).
    col = np.arange(HW, dtype=np.int64) % W
    m_np = np.stack(
        [((col + kw * dil - pad >= 0) & (col + kw * dil - pad < W)) for kw in range(K)],
        axis=0).astype(np.float32)
    masks = jnp.asarray(m_np)                      # (K, HW)

    CB = _pick_channel_block(C, HW, x_nchw.dtype.itemsize)
    grid = (N, C // CB)

    kernel = functools.partial(_dw_kernel, K=K, dil=dil, pad=pad, W=W, HW=HW, CB=CB)

    out3 = pl.pallas_call(
        kernel,
        out_shape=jax.ShapeDtypeStruct((N, C, HW), x_nchw.dtype),
        grid_spec=pltpu.PrefetchScalarGridSpec(
            num_scalar_prefetch=0,
            grid=grid,
            in_specs=[
                pl.BlockSpec((1, CB, HW), lambda n, cb: (n, cb, 0)),
                pl.BlockSpec((CB, K * K), lambda n, cb: (cb, 0)),
                pl.BlockSpec((CB, 1), lambda n, cb: (cb, 0)),
                pl.BlockSpec((K, HW), lambda n, cb: (0, 0)),
            ],
            out_specs=pl.BlockSpec((1, CB, HW), lambda n, cb: (n, cb, 0)),
            scratch_shapes=[pltpu.VMEM((CB, HWP), jnp.float32)],
        ),
        compiler_params=pltpu.CompilerParams(
            dimension_semantics=("parallel", "parallel")),
    )(x3, w2, b2, masks)

    return out3.reshape(N, C, H, W)


# TODO(synk): general grouped conv with 1 < g < in_planes (per-group channel
# contraction) is not implemented; only the depthwise case used by MyASPP is.


if __name__ == "__main__":
    # Synthetic config matching dw(in_planes=4, out_planes=4, k=3, g=4, pad=1, dilation=1)
    N, C, H, W = 2, 4, 16, 16
    K, PAD, DIL = 3, 1, 1

    key = jax.random.PRNGKey(0)
    kx, kw_, kb = jax.random.split(key, 3)

    x = jax.random.normal(kx, (N, C, H, W), dtype=jnp.float32)
    # Deterministic param init (mimic PyTorch uniform fan-in init for depthwise conv)
    fan_in = 1 * K * K
    bound = 1.0 / (fan_in ** 0.5)
    weight = jax.random.uniform(kw_, (C, 1, K, K), jnp.float32, -bound, bound)
    bias = jax.random.uniform(kb, (C,), jnp.float32, -bound, bound)

    out = dw_forward(x, weight, bias, K=K, pad=PAD, dil=DIL)
    out = jax.block_until_ready(out)

    # Cross-check against XLA's grouped conv (same semantics as nn.Conv2d).
    ref = jax.lax.conv_general_dilated(
        x, weight, window_strides=(1, 1),
        padding=[(PAD, PAD), (PAD, PAD)],
        rhs_dilation=(DIL, DIL),
        dimension_numbers=("NCHW", "OIHW", "NCHW"),
        feature_group_count=C,
    ) + bias.reshape(1, C, 1, 1)
    ref = jax.block_until_ready(ref)

    assert out.shape == (N, C, H, W), out.shape
    assert jnp.allclose(out, ref, atol=1e-5, rtol=1e-5), float(jnp.max(jnp.abs(out - ref)))
    print("KERNEL_OK")
</pallas_src>

<mosaic_0001>
module attributes {stable_mosaic.version = 11 : i64} {
  func.func @_dw_kernel(%arg0: i32, %arg1: i32, %arg2: memref<1x4x256xf32, #tpu.memory_space<vmem>>, %arg3: memref<4x9xf32, #tpu.memory_space<vmem>>, %arg4: memref<4x1xf32, #tpu.memory_space<vmem>>, %arg5: memref<3x256xf32, #tpu.memory_space<vmem>>, %arg6: memref<1x4x256xf32, #tpu.memory_space<vmem>>, %arg7: memref<4x290xf32, #tpu.memory_space<vmem>>) attributes {dimension_semantics = [#tpu.dimension_semantics<parallel>, #tpu.dimension_semantics<parallel>], iteration_bounds = array<i64: 2, 1>, scalar_prefetch = 0 : i64, scratch_operands = 1 : i64, tpu.core_type = #tpu.core_type<tc>, window_params = [{transform_indices = @transform_0, window_bounds = array<i64: 1, 4, 256>}, {transform_indices = @transform_1, window_bounds = array<i64: 4, 9>}, {transform_indices = @transform_2, window_bounds = array<i64: 4, 1>}, {pipeline_mode = #tpu.pipeline_mode<synchronous>, transform_indices = @transform_3, window_bounds = array<i64: 3, 256>}, {transform_indices = @transform_4, window_bounds = array<i64: 1, 4, 256>}]} {
    %cst = arith.constant 0.000000e+00 : f32
    %0 = vector.broadcast %cst : f32 to vector<4x17xf32>
    %c0 = arith.constant 0 : index
    %c0_0 = arith.constant 0 : index
    %1 = vector.load %arg7[%c0, %c0_0] : memref<4x290xf32, #tpu.memory_space<vmem>>, vector<4x17xf32>
    tpu.vector_store %arg7[%c0, %c0_0], %0 {strides = array<i32>} : memref<4x290xf32, #tpu.memory_space<vmem>>, vector<4x17xf32>,
    %cst_1 = arith.constant 0.000000e+00 : f32
    %2 = vector.broadcast %cst_1 : f32 to vector<4x17xf32>
    %c0_2 = arith.constant 0 : index
    %c273 = arith.constant 273 : index
    %3 = vector.load %arg7[%c0_2, %c273] : memref<4x290xf32, #tpu.memory_space<vmem>>, vector<4x17xf32>
    tpu.vector_store %arg7[%c0_2, %c273], %2 {strides = array<i32>} : memref<4x290xf32, #tpu.memory_space<vmem>>, vector<4x17xf32>,
    %c0_3 = arith.constant 0 : index
    %c0_4 = arith.constant 0 : index
    %c0_5 = arith.constant 0 : index
    %4 = vector.load %arg2[%c0_3, %c0_4, %c0_5] : memref<1x4x256xf32, #tpu.memory_space<vmem>>, vector<1x4x256xf32>
    %5 = vector.shape_cast %4 : vector<1x4x256xf32> to vector<4x256xf32>
    %c0_6 = arith.constant 0 : index
    %c17 = arith.constant 17 : index
    %6 = vector.load %arg7[%c0_6, %c17] : memref<4x290xf32, #tpu.memory_space<vmem>>, vector<4x256xf32>
    tpu.vector_store %arg7[%c0_6, %c17], %5 {strides = array<i32>} : memref<4x290xf32, #tpu.memory_space<vmem>>, vector<4x256xf32>,
    %c0_7 = arith.constant 0 : index
    %c0_8 = arith.constant 0 : index
    %7 = vector.load %arg3[%c0_7, %c0_8] : memref<4x9xf32, #tpu.memory_space<vmem>>, vector<4x9xf32>
    %c0_9 = arith.constant 0 : index
    %c0_10 = arith.constant 0 : index
    %8 = vector.load %arg4[%c0_9, %c0_10] : memref<4x1xf32, #tpu.memory_space<vmem>>, vector<4x1xf32>
    %c0_11 = arith.constant 0 : index
    %c0_12 = arith.constant 0 : index
    %9 = vector.load %arg5[%c0_11, %c0_12] : memref<3x256xf32, #tpu.memory_space<vmem>>, vector<3x256xf32>
    %cst_13 = arith.constant 0.000000e+00 : f32
    %10 = vector.broadcast %cst_13 : f32 to vector<4x256xf32>
    %c0_14 = arith.constant 0 : index
    %c0_15 = arith.constant 0 : index
    %11 = vector.load %arg7[%c0_14, %c0_15] : memref<4x290xf32, #tpu.memory_space<vmem>>, vector<4x256xf32>
    %12 = vector.extract_strided_slice %9 {offsets = [0, 0], sizes = [1, 256], strides = [1, 1]} : vector<3x256xf32> to vector<1x256xf32>
    %13 = vector.broadcast %12 : vector<1x256xf32> to vector<4x256xf32>
    %14 = arith.mulf %11, %13 : vector<4x256xf32>
    %15 = vector.extract_strided_slice %7 {offsets = [0, 0], sizes = [4, 1], strides = [1, 1]} : vector<4x9xf32> to vector<4x1xf32>
    %16 = vector.broadcast %15 : vector<4x1xf32> to vector<4x256xf32>
    %17 = arith.mulf %14, %16 : vector<4x256xf32>
    %18 = arith.addf %10, %17 : vector<4x256xf32>
    %c0_16 = arith.constant 0 : index
    %c1 = arith.constant 1 : index
    %19 = vector.load %arg7[%c0_16, %c1] : memref<4x290xf32, #tpu.memory_space<vmem>>, vector<4x256xf32>
    %20 = vector.extract_strided_slice %7 {offsets = [0, 1], sizes = [4, 1], strides = [1, 1]} : vector<4x9xf32> to vector<4x1xf32>
    %21 = vector.broadcast %20 : vector<4x1xf32> to vector<4x256xf32>
    %22 = arith.mulf %19, %21 : vector<4x256xf32>
    %23 = arith.addf %18, %22 : vector<4x256xf32>
    %c0_17 = arith.constant 0 : index
    %c2 = arith.constant 2 : index
    %24 = vector.load %arg7[%c0_17, %c2] : memref<4x290xf32, #tpu.memory_space<vmem>>, vector<4x256xf32>
    %25 = vector.extract_strided_slice %9 {offsets = [2, 0], sizes = [1, 256], strides = [1, 1]} : vector<3x256xf32> to vector<1x256xf32>
    %26 = vector.broadcast %25 : vector<1x256xf32> to vector<4x256xf32>
    %27 = arith.mulf %24, %26 : vector<4x256xf32>
    %28 = vector.extract_strided_slice %7 {offsets = [0, 2], sizes = [4, 1], strides = [1, 1]} : vector<4x9xf32> to vector<4x1xf32>
    %29 = vector.broadcast %28 : vector<4x1xf32> to vector<4x256xf32>
    %30 = arith.mulf %27, %29 : vector<4x256xf32>
    %31 = arith.addf %23, %30 : vector<4x256xf32>
    %c0_18 = arith.constant 0 : index
    %c16 = arith.constant 16 : index
    %32 = vector.load %arg7[%c0_18, %c16] : memref<4x290xf32, #tpu.memory_space<vmem>>, vector<4x256xf32>
    %33 = vector.extract_strided_slice %9 {offsets = [0, 0], sizes = [1, 256], strides = [1, 1]} : vector<3x256xf32> to vector<1x256xf32>
    %34 = vector.broadcast %33 : vector<1x256xf32> to vector<4x256xf32>
    %35 = arith.mulf %32, %34 : vector<4x256xf32>
    %36 = vector.extract_strided_slice %7 {offsets = [0, 3], sizes = [4, 1], strides = [1, 1]} : vector<4x9xf32> to vector<4x1xf32>
    %37 = vector.broadcast %36 : vector<4x1xf32> to vector<4x256xf32>
    %38 = arith.mulf %35, %37 : vector<4x256xf32>
    %39 = arith.addf %31, %38 : vector<4x256xf32>
    %c0_19 = arith.constant 0 : index
    %c17_20 = arith.constant 17 : index
    %40 = vector.load %arg7[%c0_19, %c17_20] : memref<4x290xf32, #tpu.memory_space<vmem>>, vector<4x256xf32>
    %41 = vector.extract_strided_slice %7 {offsets = [0, 4], sizes = [4, 1], strides = [1, 1]} : vector<4x9xf32> to vector<4x1xf32>
    %42 = vector.broadcast %41 : vector<4x1xf32> to vector<4x256xf32>
    %43 = arith.mulf %40, %42 : vector<4x256xf32>
    %44 = arith.addf %39, %43 : vector<4x256xf32>
    %c0_21 = arith.constant 0 : index
    %c18 = arith.constant 18 : index
    %45 = vector.load %arg7[%c0_21, %c18] : memref<4x290xf32, #tpu.memory_space<vmem>>, vector<4x256xf32>
    %46 = vector.extract_strided_slice %9 {offsets = [2, 0], sizes = [1, 256], strides = [1, 1]} : vector<3x256xf32> to vector<1x256xf32>
    %47 = vector.broadcast %46 : vector<1x256xf32> to vector<4x256xf32>
    %48 = arith.mulf %45, %47 : vector<4x256xf32>
    %49 = vector.extract_strided_slice %7 {offsets = [0, 5], sizes = [4, 1], strides = [1, 1]} : vector<4x9xf32> to vector<4x1xf32>
    %50 = vector.broadcast %49 : vector<4x1xf32> to vector<4x256xf32>
    %51 = arith.mulf %48, %50 : vector<4x256xf32>
    %52 = arith.addf %44, %51 : vector<4x256xf32>
    %c0_22 = arith.constant 0 : index
    %c32 = arith.constant 32 : index
    %53 = vector.load %arg7[%c0_22, %c32] : memref<4x290xf32, #tpu.memory_space<vmem>>, vector<4x256xf32>
    %54 = vector.extract_strided_slice %9 {offsets = [0, 0], sizes = [1, 256], strides = [1, 1]} : vector<3x256xf32> to vector<1x256xf32>
    %55 = vector.broadcast %54 : vector<1x256xf32> to vector<4x256xf32>
    %56 = arith.mulf %53, %55 : vector<4x256xf32>
    %57 = vector.extract_strided_slice %7 {offsets = [0, 6], sizes = [4, 1], strides = [1, 1]} : vector<4x9xf32> to vector<4x1xf32>
    %58 = vector.broadcast %57 : vector<4x1xf32> to vector<4x256xf32>
    %59 = arith.mulf %56, %58 : vector<4x256xf32>
    %60 = arith.addf %52, %59 : vector<4x256xf32>
    %c0_23 = arith.constant 0 : index
    %c33 = arith.constant 33 : index
    %61 = vector.load %arg7[%c0_23, %c33] : memref<4x290xf32, #tpu.memory_space<vmem>>, vector<4x256xf32>
    %62 = vector.extract_strided_slice %7 {offsets = [0, 7], sizes = [4, 1], strides = [1, 1]} : vector<4x9xf32> to vector<4x1xf32>
    %63 = vector.broadcast %62 : vector<4x1xf32> to vector<4x256xf32>
    %64 = arith.mulf %61, %63 : vector<4x256xf32>
    %65 = arith.addf %60, %64 : vector<4x256xf32>
    %c0_24 = arith.constant 0 : index
    %c34 = arith.constant 34 : index
    %66 = vector.load %arg7[%c0_24, %c34] : memref<4x290xf32, #tpu.memory_space<vmem>>, vector<4x256xf32>
    %67 = vector.extract_strided_slice %9 {offsets = [2, 0], sizes = [1, 256], strides = [1, 1]} : vector<3x256xf32> to vector<1x256xf32>
    %68 = vector.broadcast %67 : vector<1x256xf32> to vector<4x256xf32>
    %69 = arith.mulf %66, %68 : vector<4x256xf32>
    %70 = vector.extract_strided_slice %7 {offsets = [0, 8], sizes = [4, 1], strides = [1, 1]} : vector<4x9xf32> to vector<4x1xf32>
    %71 = vector.broadcast %70 : vector<4x1xf32> to vector<4x256xf32>
    %72 = arith.mulf %69, %71 : vector<4x256xf32>
    %73 = arith.addf %65, %72 : vector<4x256xf32>
    %74 = vector.broadcast %8 : vector<4x1xf32> to vector<4x256xf32>
    %75 = arith.addf %73, %74 : vector<4x256xf32>
    %c0_25 = arith.constant 0 : index
    %c0_26 = arith.constant 0 : index
    %c0_27 = arith.constant 0 : index
    %76 = vector.load %arg6[%c0_25, %c0_26, %c0_27] : memref<1x4x256xf32, #tpu.memory_space<vmem>>, vector<1x4x256xf32>
    %77 = vector.shape_cast %76 : vector<1x4x256xf32> to vector<4x256xf32>
    %78 = vector.shape_cast %75 : vector<4x256xf32> to vector<1x4x256xf32>
    tpu.vector_store %arg6[%c0_25, %c0_26, %c0_27], %78 {strides = array<i32>} : memref<1x4x256xf32, #tpu.memory_space<vmem>>, vector<1x4x256xf32>,
    return
  }
  func.func @transform_0(%arg0: i32, %arg1: i32) -> (i32, i32, i32) {
    %c0_i32 = arith.constant 0 : i32
    %c0_i32_0 = arith.constant 0 : i32
    return %arg0, %arg1, %c0_i32 : i32, i32, i32
  }
  func.func @transform_1(%arg0: i32, %arg1: i32) -> (i32, i32) {
    %c0_i32 = arith.constant 0 : i32
    %c0_i32_0 = arith.constant 0 : i32
    return %arg1, %c0_i32 : i32, i32
  }
  func.func @transform_2(%arg0: i32, %arg1: i32) -> (i32, i32) {
    %c0_i32 = arith.constant 0 : i32
    %c0_i32_0 = arith.constant 0 : i32
    return %arg1, %c0_i32 : i32, i32
  }
  func.func @transform_3(%arg0: i32, %arg1: i32) -> (i32, i32) {
    %c0_i32 = arith.constant 0 : i32
    %c0_i32_0 = arith.constant 0 : i32
    %c0_i32_1 = arith.constant 0 : i32
    return %c0_i32, %c0_i32_0 : i32, i32
  }
  func.func @transform_4(%arg0: i32, %arg1: i32) -> (i32, i32, i32) {
    %c0_i32 = arith.constant 0 : i32
    %c0_i32_0 = arith.constant 0 : i32
    return %arg0, %arg1, %c0_i32 : i32, i32, i32
  }
}

</mosaic_0001>

<bundles_post_ra>
// kernel: tpu_custom_call.1
= control target key start
LH: loop header
LB: loop body
LE: loop exit
PB: predicated region body
PF: predicated region fallthrough
CT: control target
= control target key end

     0   :  { %9 = vsyncpa [#allocation4], 0  ;;  %s1271_s0 = inlined_call_operand.hbm [shape: f32[2,4,256], index: 0, kind: input, shape index: {}]   ;;  %s1272_s1 = inlined_call_operand.vmem [shape: f32[4,9], index: 1, kind: input, shape index: {}]   ;;  %s1273_s2 = inlined_call_operand.vmem [shape: f32[4,1], index: 2, kind: input, shape index: {}]   ;;  %s1274_s3 = inlined_call_operand.vmem [shape: f32[3,256], index: 3, kind: input, shape index: {}]   ;;  %s1275_s4 = inlined_call_operand.hbm [shape: f32[2,4,256], index: 4, kind: output, shape index: {}]  }
   0x1   :  { %11 = vsyncpa [#allocation4 + $0x1], 0 }
   0x2   :  { %12 = vsyncpa [#allocation5], 0 }
   0x3   :  { %14 = vsyncpa [#allocation5 + $0x1], 0  ;;  %s1038_s15 = smov 0   ;;  %s1040_s16 = smov 0  }
   0x4   :  { %s1042_s17 = smov 0   ;;  %s1044_s18 = smov 0  }
   0x5   :  { %s1046_s19 = smov 0   ;;  %s1048_s20 = smov 0  }
   0x6 LB: > { %s756_s21 = sadd.s32 4294967295, %s984_s20   ;;  %s757_s22 = sadd.s32 4294967294, %s984_s20   ;;  %s984_s20 = sphi %s1048_s20, %s20_s20   ;;  %s980_s19 = sphi %s1046_s19, %s1291_s19   ;;  %s976_s18 = sphi %s1044_s18, %s1290_s18   ;;  %s972_s17 = sphi %s1042_s17, %s1289_s17   ;;  %s968_s16 = sphi %s1040_s16, %s1288_s16   ;;  %s964_s15 = sphi %s1038_s15, %s1287_s15  }
   0x7   : > { %s32_s23 = sadd.s32 1, %s980_s19  ;;  %s41_s24 = sadd.s32 1, %s972_s17 }
   0x8   : > { %p34_p0 = scmp.ge.s32.totalorder %s32_s23, 2  ;;  %p48_p1 = scmp.ne.s32.totalorder %s972_s17, %s968_s16 }
   0x9   : > { %p49_p2 = scmp.eq.s32.totalorder %s984_s20, 0  ;;  %p54_p3 = scmp.ne.s32.totalorder %s968_s16, %s964_s15 }
   0xa   : > { %s1293_s23 = smov (%p34_p0, %s32_s23), 0  ;;  %p55_p5 = scmp.eq.s32.totalorder %s756_s21, 0 }
   0xb   : > { %p1079_p4 = por %p49_p2, %p48_p1  ;;  %s36_s26 = ssub.s32 %s980_s19, %s1293_s23 }
   0xc   : > { %p153_p6 = scmp.eq.s32.totalorder %s756_s21, 1  ;;  %p39_p7 = scmp.eq.s32.totalorder %s36_s26, 0 }
   0xd   : > { %p1085_p8 = por %p55_p5, %p54_p3  ;;  %p159_p10 = scmp.eq.s32.totalorder %s757_s22, 1 }
   0xe   : > { %p1089_p9 = por %p153_p6, %p48_p1  ;;  %p787_p13 = scmp.lt.s32.totalorder %s984_s20, 2 }
   0xf   : > { %s1094_s29 = scalar_select %p39_p7, %s972_s17, %s41_s24  }
  0x10   : > { %s1279_s28 = scalar_select %p1089_p9, 1, 0 }
  0x11   : > { %p1096_p11 = por %p159_p10, %p54_p3  ;;  %s196_s5 = sand.u32 1, %s972_s17  }
  0x12   : > { %s762_s6 = sshll.u32 %s196_s5, 3  ;;  %s773_s7 = sshll.u32 %s980_s19, 7 }
  0x13   : > { %s1280_s30 = scalar_select %p1096_p11, 1, 0 }
  0x14   : > { %s1107_s10 = scalar_lea.hbm %s1271_s0, %s773_s7  ;;  %s200_s11 = scalar_lea.vmem [#allocation3], %s762_s6 }
  0x15   : > { %s210_s12 = sshll.u32 %s200_s11, 4  ;;  %p1113_p0 = pnand %p787_p13, %p1079_p4  ;;  %s1109_s12 = int_to_ptr.vmem [resolvable:$true] %s210_s12 }
  0x16   : > { %s197_s14 = scalar_lea.sflag [#allocation4], %s196_s5  ;;  %s872_s21 = scalar_lea.hbm %s1107_s10, 128 }
  0x17   : > { %p873_p3 = scmp.ne.s32.totalorder %s1107_s10, %s872_s21  ;;  %p874_p5 = pneg %p1113_p0 }
  0x18   : > { %s877_s25 = scalar_lea.hbm %s1271_s0, 256  ;;  %p878_p4 = scmp.lt.u32.totalorder %s1107_s10, %s1271_s0 }
  0x19   : > { %p875_p6 = pnand %p874_p5, %p873_p3  ;;  %p879_p10 = scmp.lt.u32.totalorder %s877_s25, %s872_s21 }
  0x1a   : > { %p881_p12 = scmp.lt.u32.totalorder %s872_s21, %s1107_s10 }
  0x1b   : > { %p876_p7 = pneg %p875_p6  ;;  %p880_p13 = por %p879_p10, %p878_p4 }
  0x1d   : > { %p882_p1 = por %p881_p12, %p880_p13 }
  0x1f   : > { %p883_p2 = pnand %p882_p1, %p876_p7 }
  0x21   : > { %886 = shalt.err (!%p883_p2)
}
  0x22   : > { %s887_s5 = scalar_lea.vmem %s1109_s12, 128  ;;  %s986_s7 = smov [#allocation3]  }
  0x23   : > { %p888_p3 = scmp.ne.s32.totalorder %s1109_s12, %s887_s5  ;;  %s892_s8 = sshll.u32 %s986_s7, 4  ;;  %s893_s8 = int_to_ptr.vmem [resolvable:$false] %s892_s8 }
  0x24   : > { %s894_s9 = scalar_lea.vmem %s893_s8, 256  ;;  %p895_p9 = scmp.lt.s32.totalorder %s1109_s12, %s893_s8 }
  0x25   : > { %p890_p6 = pnand %p888_p3, %p874_p5  ;;  %p896_p4 = scmp.lt.s32.totalorder %s894_s9, %s887_s5 }
  0x27   : > { %p891_p11 = pneg %p890_p6  ;;  %p897_p10 = por %p896_p4, %p895_p9 }
  0x29   : > { %p898_p12 = pnand %p897_p10, %p891_p11 }
  0x2b   : > { %901 = shalt.err (!%p898_p12)
}
  0x2c   : > { %782 = dma.hbm_to_vmem [thread:$0]  (!%p1113_p0), %s1107_s10, 128, %s1109_s12, %s197_s14  }
  0x2d   : > { %p1282_p1 = scmp.lt.s32.totalorder %s984_s20, 3  ;;  %p1283_p2 = scmp.ge.s32.totalorder %s984_s20, 1 }
  0x2f   : > { %p216_p5 = pnand %p1283_p2, %p1282_p1 }
  0x30   : > { %s1149_s11 = sand.u32 (!%p216_p5), 1, %s968_s16  }
  0x31   : > { %219 = sbr.rel (%p216_p5) target bundleno = 368 (0x170), region = 36  ;;  %s766_s21 = sshll.u32 (!%p216_p5), %s1149_s11, 3 }
  0x32   : > { %s222_s22 = scalar_lea.sflag (!%p216_p5), [#allocation4], %s1149_s11  ;;  %s225_s13 = scalar_lea.vmem (!%p216_p5), [#allocation3], %s766_s21 }
  0x38   : > { %955 = dma.done.wait (%p1085_p8), %s222_s22, 128  }
  0x39   : > { %957 = vsyncadd (%p1085_p8), %s222_s22, 4294967168  ;;  %v987_v0 = vmov 2   ;;  %v988_v1 = vmov 1   ;;  %v289_v2 = vlaneseq  ;;  %vm266_vm0 = vcmask 134144   ;;  %v284_v9 = vld [vmem:[%s1272_s1] sm:$0xf] }
  0x3a   : > { %863 = vset.pattern.permute.xlu1 %v987_v0  ;;  %862 = vset.pattern.permute.xlu0 %v988_v1  ;;  %vm268_vm1 = vcmask 273544   ;;  %v989_v4 = vmov 0.0   ;;  %v270_v10 = vld [vmem:[%s225_s13] sm:$0xff]  ;;  %v286_v11 = vld [vmem:[%s1274_s3] sm:$0x77]  ;;  %s990_s24 = smov 17  }
  0x3b   : > { %v1159_v3 = vshrl.u32 %v289_v2, 7  ;;  %267 = vst.msk [vmem:[#allocation2] sm:$0xf] %vm266_vm0, %v989_v4  ;;  %386 = vperm.xlu1 %863, %v284_v9   ;;  %272 = vrot.lane.b32.xlu0 %v270_v10, %s990_s24  ;;  %v991_v18 = vmov 3   ;;  %v992_v22 = vmov 4   ;;  %s993_s25 = smov 2  }
  0x3c   : > { %269 = vst.msk [vmem:[#allocation2 + $0x8] sm:$0xf] %vm268_vm1, %v989_v4  ;;  %v994_v24 = vmov 5   ;;  %s995_s26 = smov 16   ;;  %v996_v25 = vmov 6   ;;  %s997_s6 = smov 32  }
  0x3d   : > { %v357_v5 = vsub.s32 2, %v1159_v3  ;;  %v361_v6 = vsub.s32 6, %v1159_v3  ;;  %v291_v7 = vsub.s32 0, %v1159_v3  ;;  %v295_v8 = vsub.s32 4, %v1159_v3  ;;  %s999_s5 = smov 18   ;;  %s1001_s7 = smov 34  }
  0x3e   : > { %v998_v26 = vmov 0   ;;  %v1000_v27 = vmov 7   ;;  %v285_v28 = vld [vmem:[%s1273_s2] sm:$0xf]  ;;  %v1002_v29 = vmov 8   ;;  %vm279_vm2 = vcmask 1043592  }
  0x3f   : > { %v358_v12 = vrot.slane %v286_v11, %v357_v5  ;;  %v362_v13 = vrot.slane %v286_v11, %v361_v6  ;;  %v292_v14 = vrot.slane %v286_v11, %v291_v7  ;;  %v296_v15 = vrot.slane %v286_v11, %v295_v8  ;;  %864 = vset.pattern.permute.xlu1 %v991_v18  ;;  %s1004_s22 = smov 127   ;;  %s1005_s13 = smov 126  }
  0x40   : > { %329 = vperm.xlu0 %862, %v284_v9   ;;  %423 = vperm.xlu1 %864, %v284_v9   ;;  %vm280_vm3 = vcmask 1047556   ;;  %vm275_vm4 = vcmask 138240   ;;  %v1003_v33 = vmov 839922192   ;;  %vm379_vm6 = vcmask 15360   ;;  %s1006_s27 = smov 112  }
  0x41   : > { %v368_v16 = vrot.slane %v358_v12, %v357_v5  ;;  %v372_v17 = vrot.slane %v362_v13, %v357_v5  ;;  %v302_v20 = vrot.slane %v292_v14, %v291_v7  ;;  %v306_v21 = vrot.slane %v296_v15, %v291_v7  ;;  %vm281_vm5 = vmor %vm280_vm3, %vm279_vm2  ;;  %s1007_s10 = smov 111   ;;  %s1008_s12 = smov 110  }
  0x42   : > { %v317_v34 = vunpack.c.l.s4 %v1003_v33  ;;  %vm416_vm7 = vcmask 130048   ;;  %vm516_vm8 = vcmask 261120   ;;  %vm479_vm9 = vcmask 146432   ;;  %s1009_s14 = smov 96   ;;  %s1010_s24 = smov 95  }
  0x43   : > { %v375_v19 = vcombine.low %v368_v16, %v372_v17  ;;  %v1172_v23 = vcombine.low %v302_v20, %v306_v21  ;;  %vm579_vm10 = vcmask 277504   ;;  %vm349_vm11 = vcmask 1043456   ;;  %p1284_p9 = scmp.ne.s32.totalorder %s1279_s28, 0 }
  0x44   : > { %865 = vset.pattern.permute.xlu0 %v992_v22  ;;  %866 = vset.pattern.permute.xlu1 %v994_v24  ;;  %v318_v35 = vunpack.c.0.s8 %v317_v34  ;;  %vm351_vm12 = vcmask 1039360   ;;  %vm407_vm13 = vcmask 1031168   ;;  %vm444_vm14 = vcmask 916480  }
  0x45   : > { %376 = vrot.lane.b32.xlu1 %v375_v19, %s993_s25  ;;  %451 = vperm.xlu0 %865, %v284_v9   ;;  %s1011_s25 = smov 94   ;;  %vm472_vm15 = vcmask 908288   ;;  %vm544_vm1 = vcmask 785408   ;;  %vm572_vm2 = vcmask 777216   ;;  %vm607_vm3 = vcmask 769024  }
  0x46   : > { %v1181_v37 = vsub.s32 %v318_v35, %v1159_v3 }
  0x49   : > { %413 = vrot.lane.b32.xlu1 %v1172_v23, %s995_s26  ;;  %867 = vset.pattern.permute.xlu0 %v996_v25  ;;  %s774_s26 = sshll.u32 %s976_s18, 7  ;;  %s626_s18 = scalar_lea.sflag [#allocation5], %s1149_s11 }
  0x4a   : > { %523 = vperm.xlu0 %867, %v284_v9   ;;  %s1222_s9 = scalar_lea.hbm %s1275_s4, %s774_s26 }
  0x4d   : > { %486 = vperm.xlu1 %866, %v284_v9  }
  0x4e   : > { %513 = vrot.lane.b32.xlu0 %v1172_v23, %s997_s6  ;;  %s257_s6 = scalar_lea.vmem [#allocation6], %s766_s21  ;;  %s1012_s21 = smov [#allocation6]  }
  0x4f   : > { %871 = vset.pattern.permute.xlu0 %v998_v26 }
  0x51   : > { %476 = vrot.lane.b32.xlu1 %v375_v19, %s999_s5  ;;  %s642_s5 = sshll.u32 %s257_s6, 4  ;;  %s1224_s5 = int_to_ptr.vmem [resolvable:$true] %s642_s5 }
  0x52   : > { %868 = vset.pattern.permute.xlu1 %v1000_v27  ;;  %576 = vrot.lane.b32.xlu0 %v375_v19, %s1001_s7 }
  0x55   : > { %551 = vperm.xlu1 %868, %v284_v9  }
  0x56   : > { %613 = vperm.xlu0 %871, %v285_v28  }
  0x59   : > { %869 = vset.pattern.permute.xlu1 %v1002_v29 }
  0x5a   : > { %586 = vperm.xlu1 %869, %v284_v9  }
  0x5e   : > { %870 = vset.pattern.permute.xlu1 %v998_v26 }
  0x5f   : > { %314 = vperm.xlu1 %870, %v284_v9  }
  0xad   : > { %v273_v30 = vpop.permute.xlu0 %272 }
  0xae   : > { %v274_v31 = vrot.slane %v273_v30, 4 }
  0xb0   : > { %v276_v32 = vsel %vm275_vm4, %v274_v31, %v273_v30  ;;  %283 = vst.msk [vmem:[#allocation2 + $0x8] sm:$0xf] %vm266_vm0, %v274_v31  ;;  %vm507_vm0 = vcmask 900096  }
  0xb1   : > { %282 = vst.msk [vmem:[#allocation2] sm:$0xff] %vm281_vm5, %v276_v32 }
  0xb7   : > { %v327_v42 = vld [vmem:[#allocation2 + $0x8] sm:$0xf] }
  0xb8   : > { %v1184_v41 = vld [vmem:[#allocation2] sm:$0xff]  ;;  %v412_v56 = vld [vmem:[#allocation2 + $0x8] sm:$0xf] }
  0xb9   : > { %v449_v4 = vld [vmem:[#allocation2 + $0x8] sm:$0xf]  ;;  %v311_v34 = vmul.f32 %v1184_v41, %v1172_v23 }
  0xba   : > { %v387_v36 = vpop.permute.xlu1 %386  ;;  %v512_v14 = vld [vmem:[#allocation2 + $0x8] sm:$0xf] }
  0xbb   : > { %v394_v48 = vrot.slane %v387_v36, %v1181_v37  ;;  %v549_v36 = vld [vmem:[#allocation2 + $0x8] sm:$0xf] }
  0xbf   : > { %v330_v38 = vpop.permute.xlu0 %329  ;;  %v424_v40 = vpop.permute.xlu1 %423 }
  0xc0   : > { %v337_v39 = vrot.slane %v330_v38, %v1181_v37  ;;  %v431_v58 = vrot.slane %v424_v40, %v1181_v37 }
  0xc2   : > { %v339_v43 = vmul.f32 %v337_v39, %v1184_v41  ;;  %v340_v44 = vmul.f32 %v337_v39, %v327_v42 }
  0xc3   : > { %v377_v45 = vpop.permute.xlu1 %376 }
  0xc4   : > { %v452_v46 = vpop.permute.xlu0 %451  ;;  %345 = vrot.lane.b32.xlu1 %v340_v44, %s1004_s22  ;;  %343 = vrot.lane.b32.xlu0 %v339_v43, %s1004_s22  ;;  %v378_v47 = vrot.slane %v377_v45, 4  ;;  %s902_s22 = scalar_lea.vmem %s1224_s5, 128 }
  0xc5   : > { %v459_v63 = vrot.slane %v452_v46, %v1181_v37  ;;  %p903_p8 = scmp.ne.s32.totalorder %s1224_s5, %s902_s22 }
  0xc6   : > { %v380_v49 = vsel %vm379_vm6, %v378_v47, %v377_v45  ;;  %v384_v50 = vmul.f32 %v378_v47, %v327_v42 }
  0xc7   : > { %v383_v51 = vmul.f32 %v380_v49, %v1184_v41  ;;  %v414_v52 = vpop.permute.xlu1 %413  ;;  %v462_v6 = vmul.f32 %v459_v63, %v449_v4  ;;  %v461_v8 = vmul.f32 %v459_v63, %v1184_v41  ;;  %p904_p11 = pnand %p903_p8, %p1284_p9 }
  0xc8   : > { %v415_v53 = vrot.slane %v414_v52, 4  ;;  %v397_v55 = vmul.f32 %v394_v48, %v384_v50 }
  0xc9   : > { %v524_v54 = vpop.permute.xlu0 %523  ;;  %v396_v57 = vmul.f32 %v394_v48, %v383_v51  ;;  %p905_p0 = pneg %p904_p11 }
  0xca   : > { %v417_v59 = vsel %vm416_vm7, %v415_v53, %v414_v52  ;;  %v421_v60 = vmul.f32 %v415_v53, %v412_v56  ;;  %402 = vrot.lane.b32.xlu1 %v397_v55, %s1005_s13  ;;  %v531_v17 = vrot.slane %v524_v54, %v1181_v37 }
  0xcb   : > { %v420_v61 = vmul.f32 %v417_v59, %v1184_v41  ;;  %400 = vrot.lane.b32.xlu0 %v396_v57, %s1005_s13  ;;  %s906_s13 = sshll.u32 %s1012_s21, 4  ;;  %s907_s13 = int_to_ptr.vmem [resolvable:$false] %s906_s13 }
  0xcc   : > { %v487_v62 = vpop.permute.xlu1 %486  ;;  %v434_v1 = vmul.f32 %v431_v58, %v421_v60  ;;  %p909_p7 = scmp.lt.s32.totalorder %s1224_s5, %s907_s13 }
  0xcd   : > { %v514_v0 = vpop.permute.xlu0 %513  ;;  %v433_v2 = vmul.f32 %v431_v58, %v420_v61  ;;  %v494_v10 = vrot.slane %v487_v62, %v1181_v37 }
  0xce   : > { %v515_v3 = vrot.slane %v514_v0, 4  ;;  %439 = vrot.lane.b32.xlu1 %v434_v1, %s1006_s27 }
  0xcf   : > { %437 = vrot.lane.b32.xlu0 %v433_v2, %s1006_s27  ;;  %s908_s27 = scalar_lea.vmem %s907_s13, 256 }
  0xd0   : > { %v477_v5 = vpop.permute.xlu1 %476  ;;  %v517_v11 = vsel %vm516_vm8, %v515_v3, %v514_v0  ;;  %v521_v18 = vmul.f32 %v515_v3, %v512_v14  ;;  %p910_p13 = scmp.lt.s32.totalorder %s908_s27, %s902_s22 }
  0xd1   : > { %v478_v7 = vrot.slane %v477_v5, 4  ;;  %v577_v9 = vpop.permute.xlu0 %576  ;;  %v520_v21 = vmul.f32 %v517_v11, %v1184_v41 }
  0xd2   : > { %467 = vrot.lane.b32.xlu1 %v462_v6, %s1007_s10  ;;  %v578_v19 = vrot.slane %v577_v9, 4  ;;  %v534_v27 = vmul.f32 %v531_v17, %v521_v18  ;;  %p911_p3 = por %p910_p13, %p909_p7 }
  0xd3   : > { %v480_v12 = vsel %vm479_vm9, %v478_v7, %v477_v5  ;;  %v484_v13 = vmul.f32 %v478_v7, %v449_v4  ;;  %465 = vrot.lane.b32.xlu0 %v461_v8, %s1007_s10  ;;  %v533_v29 = vmul.f32 %v531_v17, %v520_v21 }
  0xd4   : > { %v483_v15 = vmul.f32 %v480_v12, %v1184_v41  ;;  %v552_v16 = vpop.permute.xlu1 %551  ;;  %v580_v24 = vsel %vm579_vm10, %v578_v19, %v577_v9  ;;  %v584_v40 = vmul.f32 %v578_v19, %v549_v36  ;;  %p912_p6 = pnand %p911_p3, %p905_p0 }
  0xd5   : > { %v497_v20 = vmul.f32 %v494_v10, %v484_v13  ;;  %v559_v25 = vrot.slane %v552_v16, %v1181_v37  ;;  %v583_v30 = vmul.f32 %v580_v24, %v1184_v41  ;;  %v1204_v43 = vpop.permute.xlu0 %613 }
  0xd6   : > { %v496_v22 = vmul.f32 %v494_v10, %v483_v15 }
  0xd7   : > { %502 = vrot.lane.b32.xlu1 %v497_v20, %s1008_s12  ;;  %v561_v31 = vmul.f32 %v559_v25, %v1184_v41  ;;  %v562_v38 = vmul.f32 %v559_v25, %v549_v36 }
  0xd8   : > { %500 = vrot.lane.b32.xlu0 %v496_v22, %s1008_s12 }
  0xd9   : > { %v587_v26 = vpop.permute.xlu1 %586 }
  0xda   : > { %v594_v28 = vrot.slane %v587_v26, %v1181_v37 }
  0xdb   : > { %539 = vrot.lane.b32.xlu1 %v534_v27, %s1009_s14 }
  0xdc   : > { %537 = vrot.lane.b32.xlu0 %v533_v29, %s1009_s14  ;;  %v596_v32 = vmul.f32 %v594_v28, %v583_v30  ;;  %v597_v42 = vmul.f32 %v594_v28, %v584_v40 }
  0xde   : > { %v315_v33 = vpop.permute.xlu1 %314 }
  0xdf   : > { %v322_v35 = vrot.slane %v315_v33, %v1181_v37  ;;  %565 = vrot.lane.b32.xlu1 %v561_v31, %s1010_s24 }
  0xe0   : > { %600 = vrot.lane.b32.xlu0 %v596_v32, %s1011_s25 }
  0xe1   : > { %v324_v39 = vmul.f32 %v322_v35, %v311_v34  ;;  %v621_v34 = vrot.slane %v1204_v43, %v1181_v37 }
  0xe3   : > { %567 = vrot.lane.b32.xlu1 %v562_v38, %s1010_s24 }
  0xe7   : > { %602 = vrot.lane.b32.xlu1 %v597_v42, %s1011_s25 }
 0x136   : > { %v346_v44 = vpop.permute.xlu1 %345  ;;  %v344_v45 = vpop.permute.xlu0 %343 }
 0x137   : > { %v348_v49 = vrot.slane %v346_v44, 4  ;;  %v347_v50 = vrot.slane %v344_v45, 4 }
 0x139   : > { %v350_v55 = vsel %vm349_vm11, %v347_v50, %v348_v49 }
 0x13a   : > { %v352_v62 = vsel %vm351_vm12, %v344_v45, %v350_v55 }
 0x13b   : > { %v354_v5 = vadd.f32 %v352_v62, %v324_v39 }
 0x13c   : > { %v403_v46 = vpop.permute.xlu1 %402 }
 0x13d   : > { %v401_v47 = vpop.permute.xlu0 %400  ;;  %v405_v52 = vrot.slane %v403_v46, 4 }
 0x13e   : > { %v404_v53 = vrot.slane %v401_v47, 4 }
 0x140   : > { %v440_v23 = vpop.permute.xlu1 %439  ;;  %v406_v59 = vsel %vm349_vm11, %v404_v53, %v405_v52 }
 0x141   : > { %v438_v41 = vpop.permute.xlu0 %437  ;;  %v442_v56 = vrot.slane %v440_v23, 4  ;;  %v408_v4 = vsel %vm407_vm13, %v401_v47, %v406_v59 }
 0x142   : > { %v441_v57 = vrot.slane %v438_v41, 4  ;;  %v410_v11 = vadd.f32 %v408_v4, %v354_v5 }
 0x144   : > { %v468_v48 = vpop.permute.xlu1 %467  ;;  %v443_v0 = vsel %vm349_vm11, %v441_v57, %v442_v56 }
 0x145   : > { %v466_v51 = vpop.permute.xlu0 %465  ;;  %v470_v60 = vrot.slane %v468_v48, 4  ;;  %v445_v9 = vsel %vm444_vm14, %v438_v41, %v443_v0 }
 0x146   : > { %v469_v61 = vrot.slane %v466_v51, 4  ;;  %v447_v14 = vadd.f32 %v445_v9, %v410_v11 }
 0x148   : > { %v471_v6 = vsel %vm349_vm11, %v469_v61, %v470_v60 }
 0x149   : > { %v503_v54 = vpop.permute.xlu1 %502  ;;  %v473_v13 = vsel %vm472_vm15, %v466_v51, %v471_v6 }
 0x14a   : > { %v501_v58 = vpop.permute.xlu0 %500  ;;  %v505_v1 = vrot.slane %v503_v54, 4  ;;  %v475_v18 = vadd.f32 %v473_v13, %v447_v14 }
 0x14b   : > { %v504_v2 = vrot.slane %v501_v58, 4 }
 0x14d   : > { %v540_v63 = vpop.permute.xlu1 %539  ;;  %v506_v12 = vsel %vm349_vm11, %v504_v2, %v505_v1 }
 0x14e   : > { %v538_v3 = vpop.permute.xlu0 %537  ;;  %v542_v7 = vrot.slane %v540_v63, 4  ;;  %v508_v16 = vsel %vm507_vm0, %v501_v58, %v506_v12 }
 0x14f   : > { %v541_v8 = vrot.slane %v538_v3, 4  ;;  %v510_v24 = vadd.f32 %v508_v16, %v475_v18 }
 0x151   : > { %v566_v10 = vpop.permute.xlu1 %565  ;;  %v543_v15 = vsel %vm349_vm11, %v541_v8, %v542_v7 }
 0x152   : > { %v569_v19 = vrot.slane %v566_v10, 4  ;;  %v545_v21 = vsel %vm544_vm1, %v538_v3, %v543_v15  ;;  %v601_v22 = vpop.permute.xlu0 %600 }
 0x153   : > { %v547_v28 = vadd.f32 %v545_v21, %v510_v24  ;;  %v604_v29 = vrot.slane %v601_v22, 4 }
 0x155   : > { %v568_v17 = vpop.permute.xlu1 %567 }
 0x156   : > { %v570_v20 = vrot.slane %v568_v17, 4 }
 0x158   : > { %v571_v25 = vsel %vm349_vm11, %v569_v19, %v570_v20 }
 0x159   : > { %v573_v26 = vsel %vm572_vm2, %v566_v10, %v571_v25  ;;  %v603_v27 = vpop.permute.xlu1 %602 }
 0x15a   : > { %v605_v30 = vrot.slane %v603_v27, 4  ;;  %v575_v31 = vadd.f32 %v573_v26, %v547_v28 }
 0x15c   : > { %v606_v32 = vsel %vm349_vm11, %v604_v29, %v605_v30 }
 0x15d   : > { %v608_v33 = vsel %vm607_vm3, %v601_v22, %v606_v32 }
 0x15e   : > { %v610_v35 = vadd.f32 %v608_v33, %v575_v31 }
 0x160   : > { %v623_v36 = vadd.f32 %v621_v34, %v610_v35 }
 0x162   : > { %624 = vst [vmem:[%s257_s6] sm:$0xff] %v623_v36 }
 0x163   : > { %915 = shalt.err (!%p912_p6)
}
 0x164   : > { %s916_s11 = scalar_lea.hbm %s1222_s9, 128  ;;  %s920_s14 = scalar_lea.hbm %s1275_s4, 256 }
 0x165   : > { %p917_p4 = scmp.ne.s32.totalorder %s1222_s9, %s916_s11  ;;  %p921_p1 = scmp.lt.u32.totalorder %s1222_s9, %s1275_s4 }
 0x166   : > { %p922_p2 = scmp.lt.u32.totalorder %s920_s14, %s916_s11  ;;  %p924_p8 = scmp.lt.u32.totalorder %s916_s11, %s1222_s9 }
 0x167   : > { %p918_p10 = pnand %p917_p4, %p1284_p9 }
 0x168   : > { %p923_p5 = por %p922_p2, %p921_p1 }
 0x169   : > { %p919_p12 = pneg %p918_p10 }
 0x16a   : > { %p925_p11 = por %p924_p8, %p923_p5 }
 0x16c   : > { %p926_p0 = pnand %p925_p11, %p919_p12 }
 0x16e   : > { %929 = shalt.err (!%p926_p0)
}
 0x16f   : > { %777 = dma.vmem_to_hbm [thread:$0]  (%p1284_p9), %s1224_s5, 128, %s1222_s9, %s626_s18  }
 0x170 PF: > { %s654_s26 = sand.u32 1, %s964_s15   ;;  %p1285_p7 = scmp.ne.s32.totalorder %s1280_s30, 0 }
 0x171   : > { %p1286_p13 = scmp.ge.s32.totalorder %s984_s20, 2  ;;  %s655_s6 = scalar_lea.sflag [#allocation5], %s654_s26 }
 0x173   : > { %p784_p3 = pnand %p1286_p13, %p1285_p7 }
 0x175   : > { %959 = dma.done.wait (!%p784_p3), %s655_s6, 128  }
 0x176   : > { %961 = vsyncadd (!%p784_p3), %s655_s6, 4294967168  ;;  %s20_s20 = sadd.s32 1, %s984_s20   ;;  %s1287_s15 = smov %s968_s16 }
 0x177   : > { %p17_p6 = scmp.ge.s32.totalorder %s20_s20, 4   ;;  %s1288_s16 = smov %s972_s17 }
 0x178   : > { %s1289_s17 = smov %s1094_s29  ;;  %s1290_s18 = smov %s980_s19 }
 0x179   : > { %s1291_s19 = smov %s1293_s23  ;;  %19 = sbr.rel (!%p17_p6) target bundleno = 6 (0x6), region = 87 }
 0x180   :  { %660 = vsyncpa [#allocation4], 1 }
 0x181   :  { %662 = vsyncpa [#allocation4 + $0x1], 1 }
 0x182   :  { %663 = vsyncpa [#allocation5], 1 }
 0x183   :  { %665 = vsyncpa [#allocation5 + $0x1], 1 }

</bundles_post_ra>
